<compile_context>
chip_gen: v5e
topology: v5e:2x2
jax: 0.10.0
libtpu: 0.0.40
codegen_flags: <defaults>
</compile_context>

<pallas_src>
import jax
import jax.numpy as jnp
from jax import lax
from jax.experimental import pallas as pl
from jax.experimental.pallas import tpu as pltpu

# stand-ins for the repo's `constant` module
PAD_IDX, UNK_IDX, SOU_IDX, EOU_IDX = 0, 1, 2, 3
MIN_DEC_LEN = 1


# ----------------------------------------------------------------------------
# Pallas kernel: grid = (batch_tiles, T); one inner step == one decode step t
# ----------------------------------------------------------------------------
def rlseq_decode_kernel(
    # inputs
    srcred_ref, dec_h0_ref, emb_ref,
    w_gates_ref, b_gates_ref,
    w_out_ref, b_out_ref,
    wb_ref, bb_ref,
    # outputs
    probs_ref, xs_ref, loss_ref, maskout_ref, rs_ref,
    # scratch (carried across decode steps t within a batch tile)
    dec_h, x_scr, mask_scr,
):
    t = pl.program_id(1)
    Bt, H = dec_h.shape
    V = probs_ref.shape[2]

    # --- t == 0: initialize carried decoder state for this batch tile -------
    @pl.when(t == 0)
    def _init():
        dec_h[...] = dec_h0_ref[...]                             # reduce_state'd
        x_scr[...] = jnp.full(x_scr.shape, SOU_IDX, jnp.int32)   # x_0 = sou
        mask_scr[...] = jnp.ones(mask_scr.shape, jnp.float32)    # step_mask = 1

    # --- embedding lookup: dynamic row gather (no one-hot matmul) -----------
    rows = []
    for b in range(Bt):                                 # tiny static loop
        idx = x_scr[b, 0]
        rows.append(emb_ref[pl.ds(idx, 1), :])          # (1, D)
    emb_x = jnp.concatenate(rows, axis=0)               # (Bt, D) f32

    # --- fused-gate GRU step: single (Bt, D+H) @ (D+H, 3H) bf16 GEMM --------
    # (fused-gate GRU variant; decoder is a synthetic stand-in anyway)
    h = dec_h[...]                                               # (Bt, H) f32
    xh = jnp.concatenate([emb_x, h], axis=1).astype(jnp.bfloat16)
    gates = jnp.dot(xh, w_gates_ref[...],
                    preferred_element_type=jnp.float32) + b_gates_ref[...]
    r = jax.nn.sigmoid(gates[:, :H])
    z = jax.nn.sigmoid(gates[:, H:2 * H])
    n = jnp.tanh(r * gates[:, 2 * H:])
    h_new = (1.0 - z) * n + z * h                                # (Bt, H) f32

    # --- dot attention over reduce_state(src_h): batched MXU einsums --------
    sred = srcred_ref[...]                                       # (Bt, S, H)
    scores = jnp.einsum('bqh,bsh->bqs', h_new[:, None, :], sred,
                        preferred_element_type=jnp.float32)      # (Bt, 1, S)
    scores = scores - jnp.max(scores, axis=-1, keepdims=True)
    attw = jnp.exp(scores)
    attw = attw * pl.reciprocal(jnp.sum(attw, axis=-1, keepdims=True),
                                approx=True)
    ctx = jnp.einsum('bqs,bsh->bqh', attw, sred,
                     preferred_element_type=jnp.float32)[:, 0, :]  # (Bt, H)

    # --- fused output head: [h_new, ctx] @ (2H, V) bf16 GEMM + softmax ------
    hc = jnp.concatenate([h_new, ctx], axis=1).astype(jnp.bfloat16)
    logits = jnp.dot(hc, w_out_ref[...],
                     preferred_element_type=jnp.float32) + b_out_ref[...]
    logits = logits - jnp.max(logits, axis=-1, keepdims=True)
    ey = jnp.exp(logits)
    y = ey * pl.reciprocal(jnp.sum(ey, axis=-1, keepdims=True), approx=True)

    # decode(): mask unk always, mask eou while t < min_dec_len.  Use 0.0
    # instead of -inf so the stored probs stay a finite distribution; the
    # greedy argmax and the gathered gold probability are identical.
    col_v = lax.broadcasted_iota(jnp.int32, (Bt, V), 1)
    masked = jnp.logical_or(
        col_v == UNK_IDX,
        jnp.logical_and(col_v == EOU_IDX, t < MIN_DEC_LEN))
    y = jnp.where(masked, 0.0, y)

    # greedy x_t = argmax (first index on ties), gold_prob = y[b, x_t[b]]
    gold = jnp.max(y, axis=-1, keepdims=True)                    # (Bt, 1)
    x_new = jnp.min(jnp.where(y == gold, col_v, V), axis=-1).astype(jnp.int32)
    gold = gold[:, 0]                                            # (Bt,)

    mask = mask_scr[...][:, 0]                                   # pre-update mask
    step_loss = -jnp.log(gold) * mask
    new_mask = jnp.maximum(
        mask - (x_new == EOU_IDX).astype(jnp.float32), 0.0)

    # baseline reward on the new decoder state; the reference clamps
    # step_mask *before* rs[t], so rs uses the post-update mask.
    base = (jnp.dot(h_new, wb_ref[...], preferred_element_type=jnp.float32)
            + bb_ref[...])[:, 0]                                 # (Bt,)
    r_t = base * new_mask

    # --- per-step writes -----------------------------------------------------
    probs_ref[...] = y[None]                       # (1, Bt, V), lane-dense DMA
    # small outputs are VMEM-resident (T, Bt) accumulators, flushed once.
    xs_ref[pl.ds(t, 1), :] = x_new[None, :]
    loss_ref[pl.ds(t, 1), :] = step_loss[None, :]
    maskout_ref[pl.ds(t, 1), :] = mask[None, :]    # step_masks (pre-update)
    rs_ref[pl.ds(t, 1), :] = r_t[None, :]

    # --- carry state to t+1 --------------------------------------------------
    dec_h[...] = h_new
    x_scr[...] = x_new[:, None]
    mask_scr[...] = new_mask[:, None]


# ----------------------------------------------------------------------------
# Glue: synthetic encoder + parameter setup + pallas_call wrapper
# ----------------------------------------------------------------------------
def synthetic_encoder(seqs, p):
    # layout: seqs (B, S) int32 -> src_h (B, S, 2H), src_h_0 (B, 2H)
    e = p["enc_emb"][seqs]                               # (B, S, 2H)
    src_h = jnp.tanh(e @ p["enc_w"] + p["enc_b"])        # (B, S, 2H)
    src_h0 = src_h[:, -1, :]                             # (B, 2H)
    return src_h, src_h0


def init_params(key, V, D, H):
    ks = jax.random.split(key, 14)

    def w(k, shape, fan_in):
        return jax.random.normal(k, shape, jnp.float32) * (1.0 / jnp.sqrt(fan_in))

    return {
        # synthetic encoder (injected module stand-in)
        "enc_emb": w(ks[0], (V, 2 * H), 2 * H),
        "enc_w": w(ks[1], (2 * H, 2 * H), 2 * H),
        "enc_b": jnp.zeros((2 * H,), jnp.float32),
        # synthetic decoder: embedding, GRU cell, attention output head
        "dec_emb": w(ks[2], (V, D), D),
        "wx": w(ks[3], (D, 3 * H), D),
        "wh": w(ks[4], (H, 3 * H), H),
        "bx": jnp.zeros((1, 3 * H), jnp.float32),
        "bh": jnp.zeros((1, 3 * H), jnp.float32),
        "wout_h": w(ks[5], (H, V), H),
        "wout_c": w(ks[6], (H, V), H),
        "bout": jnp.zeros((1, V), jnp.float32),
        # RLSeq.reduce_state : Linear(2H, H)
        "wr": w(ks[7], (2 * H, H), 2 * H),
        "br": jnp.zeros((1, H), jnp.float32),
        # RLSeq.baseline_reward : Linear(H, 1)
        "wb": w(ks[8], (H, 1), H),
        "bb": jnp.zeros((1, 1), jnp.float32),
    }


@jax.jit
def rlseq_forward(seqs, targets, params):
    B, T = targets.shape
    S = seqs.shape[1]
    V, D = params["dec_emb"].shape
    H = params["wr"].shape[1]

    src_h, src_h0 = synthetic_encoder(seqs, params)

    # RLSeq.encode(): reduce_state on the bidirectional states, hoisted out
    # of the kernel as two batched XLA GEMMs.
    srcred = jnp.dot(src_h, params["wr"]) + params["br"]        # (B, S, H)
    dec_h0 = jnp.dot(src_h0, params["wr"]) + params["br"]       # (B, H)

    # Fused weights; bf16 MXU inputs, f32 accumulation inside the kernel.
    w_gates = jnp.concatenate(
        [params["wx"], params["wh"]], axis=0).astype(jnp.bfloat16)  # (D+H, 3H)
    b_gates = params["bx"] + params["bh"]                           # (1, 3H)
    w_out = jnp.concatenate(
        [params["wout_h"], params["wout_c"]], axis=0).astype(jnp.bfloat16)

    TB = B                    # batch tile (set to B//2 on v7x for 2 TCs)
    nb = B // TB

    const = lambda shape: pl.BlockSpec(shape, lambda b, t: (0,) * len(shape))

    grid_spec = pltpu.PrefetchScalarGridSpec(
        num_scalar_prefetch=0,
        grid=(nb, T),
        in_specs=[
            pl.BlockSpec((TB, S, H), lambda b, t: (b, 0, 0)),   # reduce_state(src_h)
            pl.BlockSpec((TB, H), lambda b, t: (b, 0)),         # reduce_state(dec_h0)
            const((V, D)),          # decoder embedding (f32)
            const((D + H, 3 * H)),  # fused GRU gate weights (bf16)
            const((1, 3 * H)),      # fused GRU gate bias
            const((2 * H, V)),      # fused output-head weights (bf16)
            const((1, V)),          # output bias
            const((H, 1)),          # baseline_reward W
            const((1, 1)),          # baseline_reward b
        ],
        out_specs=[
            pl.BlockSpec((1, TB, V), lambda b, t: (t, b, 0)),   # probs (per step)
            pl.BlockSpec((T, TB), lambda b, t: (0, b)),         # xs (resident)
            pl.BlockSpec((T, TB), lambda b, t: (0, b)),         # step losses
            pl.BlockSpec((T, TB), lambda b, t: (0, b)),         # step masks
            pl.BlockSpec((T, TB), lambda b, t: (0, b)),         # baseline rewards
        ],
        scratch_shapes=[
            pltpu.VMEM((TB, H), jnp.float32),    # dec_h_t
            pltpu.VMEM((TB, 1), jnp.int32),      # x_t (gather indices)
            pltpu.VMEM((TB, 1), jnp.float32),    # step_mask
        ],
    )

    probs, xs, losses, masks, rs = pl.pallas_call(
        rlseq_decode_kernel,
        grid_spec=grid_spec,
        out_shape=[
            jax.ShapeDtypeStruct((T, B, V), jnp.float32),
            jax.ShapeDtypeStruct((T, B), jnp.int32),
            jax.ShapeDtypeStruct((T, B), jnp.float32),
            jax.ShapeDtypeStruct((T, B), jnp.float32),
            jax.ShapeDtypeStruct((T, B), jnp.float32),
        ],
        compiler_params=pltpu.CompilerParams(
            dimension_semantics=("parallel", "arbitrary"),
            vmem_limit_bytes=32 * 1024 * 1024),
    )(
        srcred, dec_h0, params["dec_emb"],
        w_gates, b_gates, w_out, params["bout"],
        params["wb"], params["bb"],
    )

    step_losses = losses.T                      # (B, T)  torch.stack(step_losses, 1)
    dec_lens_var = jnp.sum(masks, axis=0)       # (B,)
    return step_losses, dec_lens_var, rs, probs, xs


if __name__ == "__main__":
    B, S, T, H, D, V = 2, 8, 8, 32, 32, 128

    key = jax.random.PRNGKey(0)
    k_p, k_s, k_t = jax.random.split(key, 3)
    params = init_params(k_p, V, D, H)
    seqs = jax.random.randint(k_s, (B, S), 4, V, dtype=jnp.int32)
    targets = jax.random.randint(k_t, (B, T), 4, V, dtype=jnp.int32)

    outs = rlseq_forward(seqs, targets, params)
    jax.block_until_ready(outs)

    step_losses, dec_lens_var, rs, probs, xs = outs
    assert step_losses.shape == (B, T)
    assert dec_lens_var.shape == (B,)
    assert rs.shape == (T, B)
    assert probs.shape == (T, B, V)
    assert xs.shape == (T, B)
    assert bool(jnp.all(jnp.isfinite(step_losses)))
    assert bool(jnp.all(jnp.isfinite(probs)))
    print("KERNEL_OK")
</pallas_src>

<mosaic_0001>
module attributes {stable_mosaic.version = 11 : i64} {
  func.func @rlseq_decode_kernel(%arg0: i32, %arg1: i32, %arg2: memref<2x8x32xf32, #tpu.memory_space<vmem>>, %arg3: memref<2x32xf32, #tpu.memory_space<vmem>>, %arg4: memref<128x32xf32, #tpu.memory_space<vmem>>, %arg5: memref<64x96xbf16, #tpu.memory_space<vmem>>, %arg6: memref<1x96xf32, #tpu.memory_space<vmem>>, %arg7: memref<64x128xbf16, #tpu.memory_space<vmem>>, %arg8: memref<1x128xf32, #tpu.memory_space<vmem>>, %arg9: memref<32x1xf32, #tpu.memory_space<vmem>>, %arg10: memref<1x1xf32, #tpu.memory_space<vmem>>, %arg11: memref<1x2x128xf32, #tpu.memory_space<vmem>>, %arg12: memref<8x2xi32, #tpu.memory_space<vmem>>, %arg13: memref<8x2xf32, #tpu.memory_space<vmem>>, %arg14: memref<8x2xf32, #tpu.memory_space<vmem>>, %arg15: memref<8x2xf32, #tpu.memory_space<vmem>>, %arg16: memref<2x32xf32, #tpu.memory_space<vmem>>, %arg17: memref<2x1xi32, #tpu.memory_space<vmem>>, %arg18: memref<2x1xf32, #tpu.memory_space<vmem>>) attributes {dimension_semantics = [#tpu.dimension_semantics<parallel>, #tpu.dimension_semantics<arbitrary>], iteration_bounds = array<i64: 1, 8>, scalar_prefetch = 0 : i64, scratch_operands = 3 : i64, tpu.core_type = #tpu.core_type<tc>, window_params = [{transform_indices = @transform_0, window_bounds = array<i64: 2, 8, 32>}, {transform_indices = @transform_1, window_bounds = array<i64: 2, 32>}, {pipeline_mode = #tpu.pipeline_mode<synchronous>, transform_indices = @transform_2, window_bounds = array<i64: 128, 32>}, {pipeline_mode = #tpu.pipeline_mode<synchronous>, transform_indices = @transform_3, window_bounds = array<i64: 64, 96>}, {pipeline_mode = #tpu.pipeline_mode<synchronous>, transform_indices = @transform_4, window_bounds = array<i64: 1, 96>}, {pipeline_mode = #tpu.pipeline_mode<synchronous>, transform_indices = @transform_5, window_bounds = array<i64: 64, 128>}, {pipeline_mode = #tpu.pipeline_mode<synchronous>, transform_indices = @transform_6, window_bounds = array<i64: 1, 128>}, {pipeline_mode = #tpu.pipeline_mode<synchronous>, transform_indices = @transform_7, window_bounds = array<i64: 32, 1>}, {pipeline_mode = #tpu.pipeline_mode<synchronous>, transform_indices = @transform_8, window_bounds = array<i64: 1, 1>}, {transform_indices = @transform_9, window_bounds = array<i64: 1, 2, 128>}, {transform_indices = @transform_10, window_bounds = array<i64: 8, 2>}, {transform_indices = @transform_11, window_bounds = array<i64: 8, 2>}, {transform_indices = @transform_12, window_bounds = array<i64: 8, 2>}, {transform_indices = @transform_13, window_bounds = array<i64: 8, 2>}]} {
    %c0_i32 = arith.constant 0 : i32
    %0 = arith.cmpi eq, %arg1, %c0_i32 : i32
    %1 = arith.extui %0 : i1 to i32
    %c0_i32_0 = arith.constant 0 : i32
    %2 = arith.cmpi ne, %1, %c0_i32_0 : i32
    scf.if %2 {
      %c0_55 = arith.constant 0 : index
      %c0_56 = arith.constant 0 : index
      %130 = vector.load %arg3[%c0_55, %c0_56] : memref<2x32xf32, #tpu.memory_space<vmem>>, vector<2x32xf32>
      %c0_57 = arith.constant 0 : index
      %c0_58 = arith.constant 0 : index
      %131 = vector.load %arg16[%c0_57, %c0_58] : memref<2x32xf32, #tpu.memory_space<vmem>>, vector<2x32xf32>
      tpu.vector_store %arg16[%c0_57, %c0_58], %130 {strides = array<i32>} : memref<2x32xf32, #tpu.memory_space<vmem>>, vector<2x32xf32>,
      %c2_i32 = arith.constant 2 : i32
      %132 = vector.broadcast %c2_i32 : i32 to vector<2x1xi32>
      %c0_59 = arith.constant 0 : index
      %c0_60 = arith.constant 0 : index
      %133 = vector.load %arg17[%c0_59, %c0_60] : memref<2x1xi32, #tpu.memory_space<vmem>>, vector<2x1xi32>
      tpu.vector_store %arg17[%c0_59, %c0_60], %132 {strides = array<i32>} : memref<2x1xi32, #tpu.memory_space<vmem>>, vector<2x1xi32>,
      %cst_61 = arith.constant 1.000000e+00 : f32
      %134 = vector.broadcast %cst_61 : f32 to vector<2x1xf32>
      %c0_62 = arith.constant 0 : index
      %c0_63 = arith.constant 0 : index
      %135 = vector.load %arg18[%c0_62, %c0_63] : memref<2x1xf32, #tpu.memory_space<vmem>>, vector<2x1xf32>
      tpu.vector_store %arg18[%c0_62, %c0_63], %134 {strides = array<i32>} : memref<2x1xf32, #tpu.memory_space<vmem>>, vector<2x1xf32>,
    } else {
    }
    %c0 = arith.constant 0 : index
    %c0_1 = arith.constant 0 : index
    %3 = vector.load %arg17[%c0, %c0_1] : memref<2x1xi32, #tpu.memory_space<vmem>>, vector<1x1xi32>
    %4 = vector.extract %3[0, 0] : i32 from vector<1x1xi32>
    %5 = arith.index_cast %4 : i32 to index
    %c0_2 = arith.constant 0 : index
    %6 = vector.load %arg4[%5, %c0_2] : memref<128x32xf32, #tpu.memory_space<vmem>>, vector<1x32xf32>
    %c1 = arith.constant 1 : index
    %c0_3 = arith.constant 0 : index
    %7 = vector.load %arg17[%c1, %c0_3] : memref<2x1xi32, #tpu.memory_space<vmem>>, vector<1x1xi32>
    %8 = vector.extract %7[0, 0] : i32 from vector<1x1xi32>
    %9 = arith.index_cast %8 : i32 to index
    %c0_4 = arith.constant 0 : index
    %10 = vector.load %arg4[%9, %c0_4] : memref<128x32xf32, #tpu.memory_space<vmem>>, vector<1x32xf32>
    %11 = tpu.concatenate %6, %10 in 0 : vector<1x32xf32>, vector<1x32xf32> -> vector<2x32xf32>
    %c0_5 = arith.constant 0 : index
    %c0_6 = arith.constant 0 : index
    %12 = vector.load %arg16[%c0_5, %c0_6] : memref<2x32xf32, #tpu.memory_space<vmem>>, vector<2x32xf32>
    %13 = tpu.concatenate %11, %12 in 1 : vector<2x32xf32>, vector<2x32xf32> -> vector<2x64xf32>
    %14 = arith.truncf %13 : vector<2x64xf32> to vector<2x64xbf16>
    %c0_7 = arith.constant 0 : index
    %c0_8 = arith.constant 0 : index
    %15 = vector.load %arg5[%c0_7, %c0_8] : memref<64x96xbf16, #tpu.memory_space<vmem>>, vector<64x96xbf16>
    %cst = arith.constant dense<0.000000e+00> : vector<2x96xf32>
    %16 = tpu.matmul %14, %15, %cst {dimension_numbers = #tpu.dot_dimension_numbers<[1], [0], [0], [1], [0, 0, 1, 1], [], []>} : vector<2x64xbf16>, vector<64x96xbf16>, vector<2x96xf32> -> vector<2x96xf32>
    %c0_9 = arith.constant 0 : index
    %c0_10 = arith.constant 0 : index
    %17 = vector.load %arg6[%c0_9, %c0_10] : memref<1x96xf32, #tpu.memory_space<vmem>>, vector<1x96xf32>
    %18 = vector.broadcast %17 : vector<1x96xf32> to vector<2x96xf32>
    %19 = arith.addf %16, %18 : vector<2x96xf32>
    %20 = vector.extract_strided_slice %19 {offsets = [0, 0], sizes = [2, 32], strides = [1, 1]} : vector<2x96xf32> to vector<2x32xf32>
    %21 = arith.negf %20 : vector<2x32xf32>
    %22 = math.exp %21 : vector<2x32xf32>
    %cst_11 = arith.constant 1.000000e+00 : f32
    %23 = vector.broadcast %cst_11 : f32 to vector<2x32xf32>
    %24 = arith.addf %23, %22 : vector<2x32xf32>
    %25 = arith.divf %23, %24 : vector<2x32xf32>
    %26 = vector.extract_strided_slice %19 {offsets = [0, 32], sizes = [2, 32], strides = [1, 1]} : vector<2x96xf32> to vector<2x32xf32>
    %27 = arith.negf %26 : vector<2x32xf32>
    %28 = math.exp %27 : vector<2x32xf32>
    %cst_12 = arith.constant 1.000000e+00 : f32
    %29 = vector.broadcast %cst_12 : f32 to vector<2x32xf32>
    %30 = arith.addf %29, %28 : vector<2x32xf32>
    %31 = arith.divf %29, %30 : vector<2x32xf32>
    %32 = vector.extract_strided_slice %19 {offsets = [0, 64], sizes = [2, 32], strides = [1, 1]} : vector<2x96xf32> to vector<2x32xf32>
    %33 = arith.mulf %25, %32 : vector<2x32xf32>
    %34 = math.tanh %33 : vector<2x32xf32>
    %cst_13 = arith.constant 1.000000e+00 : f32
    %35 = vector.broadcast %cst_13 : f32 to vector<2x32xf32>
    %36 = arith.subf %35, %31 : vector<2x32xf32>
    %37 = arith.mulf %36, %34 : vector<2x32xf32>
    %38 = arith.mulf %31, %12 : vector<2x32xf32>
    %39 = arith.addf %37, %38 : vector<2x32xf32>
    %c0_14 = arith.constant 0 : index
    %c0_15 = arith.constant 0 : index
    %c0_16 = arith.constant 0 : index
    %40 = vector.load %arg2[%c0_14, %c0_15, %c0_16] : memref<2x8x32xf32, #tpu.memory_space<vmem>>, vector<2x8x32xf32>
    %41 = vector.shape_cast %39 : vector<2x32xf32> to vector<2x1x32xf32>
    "tpu.trace_start"() <{level = 10 : i32, message = "bqh,bsh->bqs"}> : () -> ()
    %cst_17 = arith.constant dense<0.000000e+00> : vector<2x1x8xf32>
    %42 = tpu.matmul %41, %40, %cst_17 {dimension_numbers = #tpu.dot_dimension_numbers<[2], [2], [1], [1], [0, 0, 0, 1, 1, 1], [0], [0]>} : vector<2x1x32xf32>, vector<2x8x32xf32>, vector<2x1x8xf32> -> vector<2x1x8xf32>
    "tpu.trace_stop"() : () -> ()
    %cst_18 = arith.constant dense<0xFF800000> : vector<2x1xf32>
    %43 = vector.multi_reduction <maximumf>, %42, %cst_18 [2] : vector<2x1x8xf32> to vector<2x1xf32>
    %44 = vector.shape_cast %43 : vector<2x1xf32> to vector<2x1x1xf32>
    %45 = vector.broadcast %44 : vector<2x1x1xf32> to vector<2x1x8xf32>
    %46 = arith.subf %42, %45 : vector<2x1x8xf32>
    %47 = math.exp %46 : vector<2x1x8xf32>
    %cst_19 = arith.constant dense<0.000000e+00> : vector<2x1xf32>
    %48 = vector.multi_reduction <add>, %47, %cst_19 [2] : vector<2x1x8xf32> to vector<2x1xf32>
    %49 = vector.shape_cast %48 : vector<2x1xf32> to vector<2x1x1xf32>
    %50 = tpu.reciprocal %49 {approx = true} : vector<2x1x1xf32> -> vector<2x1x1xf32>
    %51 = vector.broadcast %50 : vector<2x1x1xf32> to vector<2x1x8xf32>
    %52 = arith.mulf %47, %51 : vector<2x1x8xf32>
    "tpu.trace_start"() <{level = 10 : i32, message = "bqs,bsh->bqh"}> : () -> ()
    %cst_20 = arith.constant dense<0.000000e+00> : vector<2x1x32xf32>
    %53 = tpu.matmul %52, %40, %cst_20 {dimension_numbers = #tpu.dot_dimension_numbers<[2], [1], [1], [2], [0, 0, 0, 1, 1, 2], [0], [0]>} : vector<2x1x8xf32>, vector<2x8x32xf32>, vector<2x1x32xf32> -> vector<2x1x32xf32>
    "tpu.trace_stop"() : () -> ()
    %54 = vector.shape_cast %53 : vector<2x1x32xf32> to vector<2x32xf32>
    %55 = tpu.concatenate %39, %54 in 1 : vector<2x32xf32>, vector<2x32xf32> -> vector<2x64xf32>
    %56 = arith.truncf %55 : vector<2x64xf32> to vector<2x64xbf16>
    %c0_21 = arith.constant 0 : index
    %c0_22 = arith.constant 0 : index
    %57 = vector.load %arg7[%c0_21, %c0_22] : memref<64x128xbf16, #tpu.memory_space<vmem>>, vector<64x128xbf16>
    %cst_23 = arith.constant dense<0.000000e+00> : vector<2x128xf32>
    %58 = tpu.matmul %56, %57, %cst_23 {dimension_numbers = #tpu.dot_dimension_numbers<[1], [0], [0], [1], [0, 0, 1, 1], [], []>} : vector<2x64xbf16>, vector<64x128xbf16>, vector<2x128xf32> -> vector<2x128xf32>
    %c0_24 = arith.constant 0 : index
    %c0_25 = arith.constant 0 : index
    %59 = vector.load %arg8[%c0_24, %c0_25] : memref<1x128xf32, #tpu.memory_space<vmem>>, vector<1x128xf32>
    %60 = vector.broadcast %59 : vector<1x128xf32> to vector<2x128xf32>
    %61 = arith.addf %58, %60 : vector<2x128xf32>
    %cst_26 = arith.constant dense<0xFF800000> : vector<2xf32>
    %62 = vector.multi_reduction <maximumf>, %61, %cst_26 [1] : vector<2x128xf32> to vector<2xf32>
    %63 = vector.shape_cast %62 : vector<2xf32> to vector<2x1xf32>
    %64 = vector.broadcast %63 : vector<2x1xf32> to vector<2x128xf32>
    %65 = arith.subf %61, %64 : vector<2x128xf32>
    %66 = math.exp %65 : vector<2x128xf32>
    %cst_27 = arith.constant dense<0.000000e+00> : vector<2xf32>
    %67 = vector.multi_reduction <add>, %66, %cst_27 [1] : vector<2x128xf32> to vector<2xf32>
    %68 = vector.shape_cast %67 : vector<2xf32> to vector<2x1xf32>
    %69 = tpu.reciprocal %68 {approx = true} : vector<2x1xf32> -> vector<2x1xf32>
    %70 = vector.broadcast %69 : vector<2x1xf32> to vector<2x128xf32>
    %71 = arith.mulf %66, %70 : vector<2x128xf32>
    %72 = tpu.iota {dimensions = array<i32: 1>} : vector<2x128xi32>
    %c1_i32 = arith.constant 1 : i32
    %73 = vector.broadcast %c1_i32 : i32 to vector<2x128xi32>
    %74 = arith.cmpi eq, %72, %73 : vector<2x128xi32>
    %c3_i32 = arith.constant 3 : i32
    %75 = vector.broadcast %c3_i32 : i32 to vector<2x128xi32>
    %76 = arith.cmpi eq, %72, %75 : vector<2x128xi32>
    %c1_i32_28 = arith.constant 1 : i32
    %77 = arith.cmpi slt, %arg1, %c1_i32_28 : i32
    %78 = vector.broadcast %77 : i1 to vector<2x128xi1>
    %79 = arith.andi %76, %78 : vector<2x128xi1>
    %80 = arith.ori %74, %79 : vector<2x128xi1>
    %cst_29 = arith.constant 0.000000e+00 : f32
    %81 = vector.broadcast %cst_29 : f32 to vector<2x128xf32>
    %82 = arith.select %80, %81, %71 : vector<2x128xi1>, vector<2x128xf32>
    %cst_30 = arith.constant dense<0xFF800000> : vector<2xf32>
    %83 = vector.multi_reduction <maximumf>, %82, %cst_30 [1] : vector<2x128xf32> to vector<2xf32>
    %84 = vector.shape_cast %83 : vector<2xf32> to vector<2x1xf32>
    %85 = vector.broadcast %84 : vector<2x1xf32> to vector<2x128xf32>
    %86 = arith.cmpf oeq, %82, %85 : vector<2x128xf32>
    %c128_i32 = arith.constant 128 : i32
    %87 = vector.broadcast %c128_i32 : i32 to vector<2x128xi32>
    %88 = arith.select %86, %72, %87 : vector<2x128xi1>, vector<2x128xi32>
    %cst_31 = arith.constant dense<2147483647> : vector<2xi32>
    %89 = vector.multi_reduction <minsi>, %88, %cst_31 [1] : vector<2x128xi32> to vector<2xi32>
    %90 = vector.shape_cast %84 : vector<2x1xf32> to vector<2xf32>
    %c0_32 = arith.constant 0 : index
    %c0_33 = arith.constant 0 : index
    %91 = vector.load %arg18[%c0_32, %c0_33] : memref<2x1xf32, #tpu.memory_space<vmem>>, vector<2x1xf32>
    %92 = vector.shape_cast %91 : vector<2x1xf32> to vector<2xf32>
    %93 = math.log %90 : vector<2xf32>
    %cst_34 = arith.constant 0.000000e+00 : f32
    %94 = vector.broadcast %cst_34 : f32 to vector<2xf32>
    %95 = arith.subf %94, %93 : vector<2xf32>
    %96 = arith.mulf %95, %92 : vector<2xf32>
    %c3_i32_35 = arith.constant 3 : i32
    %97 = vector.broadcast %c3_i32_35 : i32 to vector<2xi32>
    %98 = arith.cmpi eq, %89, %97 : vector<2xi32>
    %99 = arith.extui %98 : vector<2xi1> to vector<2xi32>
    %100 = arith.sitofp %99 : vector<2xi32> to vector<2xf32>
    %101 = arith.subf %92, %100 : vector<2xf32>
    %cst_36 = arith.constant 0.000000e+00 : f32
    %102 = vector.broadcast %cst_36 : f32 to vector<2xf32>
    %103 = arith.maximumf %101, %102 : vector<2xf32>
    %c0_37 = arith.constant 0 : index
    %c0_38 = arith.constant 0 : index
    %104 = vector.load %arg9[%c0_37, %c0_38] : memref<32x1xf32, #tpu.memory_space<vmem>>, vector<32x1xf32>
    %cst_39 = arith.constant dense<0.000000e+00> : vector<2x1xf32>
    %105 = tpu.matmul %39, %104, %cst_39 {dimension_numbers = #tpu.dot_dimension_numbers<[1], [0], [0], [1], [0, 0, 1, 1], [], []>} : vector<2x32xf32>, vector<32x1xf32>, vector<2x1xf32> -> vector<2x1xf32>
    %c0_40 = arith.constant 0 : index
    %c0_41 = arith.constant 0 : index
    %106 = vector.load %arg10[%c0_40, %c0_41] : memref<1x1xf32, #tpu.memory_space<vmem>>, vector<1x1xf32>
    %107 = vector.broadcast %106 : vector<1x1xf32> to vector<2x1xf32>
    %108 = arith.addf %105, %107 : vector<2x1xf32>
    %109 = vector.shape_cast %108 : vector<2x1xf32> to vector<2xf32>
    %110 = arith.mulf %109, %103 : vector<2xf32>
    %111 = vector.shape_cast %82 : vector<2x128xf32> to vector<1x2x128xf32>
    %c0_42 = arith.constant 0 : index
    %c0_43 = arith.constant 0 : index
    %c0_44 = arith.constant 0 : index
    %112 = vector.load %arg11[%c0_42, %c0_43, %c0_44] : memref<1x2x128xf32, #tpu.memory_space<vmem>>, vector<1x2x128xf32>
    tpu.vector_store %arg11[%c0_42, %c0_43, %c0_44], %111 {strides = array<i32>} : memref<1x2x128xf32, #tpu.memory_space<vmem>>, vector<1x2x128xf32>,
    %113 = vector.shape_cast %89 : vector<2xi32> to vector<1x2xi32>
    %114 = arith.index_cast %arg1 : i32 to index
    %c0_45 = arith.constant 0 : index
    %115 = vector.load %arg12[%114, %c0_45] : memref<8x2xi32, #tpu.memory_space<vmem>>, vector<1x2xi32>
    tpu.vector_store %arg12[%114, %c0_45], %113 {strides = array<i32>} : memref<8x2xi32, #tpu.memory_space<vmem>>, vector<1x2xi32>,
    %116 = vector.shape_cast %96 : vector<2xf32> to vector<1x2xf32>
    %117 = arith.index_cast %arg1 : i32 to index
    %c0_46 = arith.constant 0 : index
    %118 = vector.load %arg13[%117, %c0_46] : memref<8x2xf32, #tpu.memory_space<vmem>>, vector<1x2xf32>
    tpu.vector_store %arg13[%117, %c0_46], %116 {strides = array<i32>} : memref<8x2xf32, #tpu.memory_space<vmem>>, vector<1x2xf32>,
    %119 = vector.shape_cast %92 : vector<2xf32> to vector<1x2xf32>
    %120 = arith.index_cast %arg1 : i32 to index
    %c0_47 = arith.constant 0 : index
    %121 = vector.load %arg14[%120, %c0_47] : memref<8x2xf32, #tpu.memory_space<vmem>>, vector<1x2xf32>
    tpu.vector_store %arg14[%120, %c0_47], %119 {strides = array<i32>} : memref<8x2xf32, #tpu.memory_space<vmem>>, vector<1x2xf32>,
    %122 = vector.shape_cast %110 : vector<2xf32> to vector<1x2xf32>
    %123 = arith.index_cast %arg1 : i32 to index
    %c0_48 = arith.constant 0 : index
    %124 = vector.load %arg15[%123, %c0_48] : memref<8x2xf32, #tpu.memory_space<vmem>>, vector<1x2xf32>
    tpu.vector_store %arg15[%123, %c0_48], %122 {strides = array<i32>} : memref<8x2xf32, #tpu.memory_space<vmem>>, vector<1x2xf32>,
    %c0_49 = arith.constant 0 : index
    %c0_50 = arith.constant 0 : index
    %125 = vector.load %arg16[%c0_49, %c0_50] : memref<2x32xf32, #tpu.memory_space<vmem>>, vector<2x32xf32>
    tpu.vector_store %arg16[%c0_49, %c0_50], %39 {strides = array<i32>} : memref<2x32xf32, #tpu.memory_space<vmem>>, vector<2x32xf32>,
    %126 = vector.shape_cast %89 : vector<2xi32> to vector<2x1xi32>
    %c0_51 = arith.constant 0 : index
    %c0_52 = arith.constant 0 : index
    %127 = vector.load %arg17[%c0_51, %c0_52] : memref<2x1xi32, #tpu.memory_space<vmem>>, vector<2x1xi32>
    tpu.vector_store %arg17[%c0_51, %c0_52], %126 {strides = array<i32>} : memref<2x1xi32, #tpu.memory_space<vmem>>, vector<2x1xi32>,
    %128 = vector.shape_cast %103 : vector<2xf32> to vector<2x1xf32>
    %c0_53 = arith.constant 0 : index
    %c0_54 = arith.constant 0 : index
    %129 = vector.load %arg18[%c0_53, %c0_54] : memref<2x1xf32, #tpu.memory_space<vmem>>, vector<2x1xf32>
    tpu.vector_store %arg18[%c0_53, %c0_54], %128 {strides = array<i32>} : memref<2x1xf32, #tpu.memory_space<vmem>>, vector<2x1xf32>,
    return
  }
  func.func @transform_0(%arg0: i32, %arg1: i32) -> (i32, i32, i32) {
    %c0_i32 = arith.constant 0 : i32
    %c0_i32_0 = arith.constant 0 : i32
    %c0_i32_1 = arith.constant 0 : i32
    return %arg0, %c0_i32, %c0_i32_0 : i32, i32, i32
  }
  func.func @transform_1(%arg0: i32, %arg1: i32) -> (i32, i32) {
    %c0_i32 = arith.constant 0 : i32
    %c0_i32_0 = arith.constant 0 : i32
    return %arg0, %c0_i32 : i32, i32
  }
  func.func @transform_2(%arg0: i32, %arg1: i32) -> (i32, i32) {
    %c0_i32 = arith.constant 0 : i32
    %c0_i32_0 = arith.constant 0 : i32
    %c0_i32_1 = arith.constant 0 : i32
    return %c0_i32, %c0_i32_0 : i32, i32
  }
  func.func @transform_3(%arg0: i32, %arg1: i32) -> (i32, i32) {
    %c0_i32 = arith.constant 0 : i32
    %c0_i32_0 = arith.constant 0 : i32
    %c0_i32_1 = arith.constant 0 : i32
    return %c0_i32, %c0_i32_0 : i32, i32
  }
  func.func @transform_4(%arg0: i32, %arg1: i32) -> (i32, i32) {
    %c0_i32 = arith.constant 0 : i32
    %c0_i32_0 = arith.constant 0 : i32
    %c0_i32_1 = arith.constant 0 : i32
    return %c0_i32, %c0_i32_0 : i32, i32
  }
  func.func @transform_5(%arg0: i32, %arg1: i32) -> (i32, i32) {
    %c0_i32 = arith.constant 0 : i32
    %c0_i32_0 = arith.constant 0 : i32
    %c0_i32_1 = arith.constant 0 : i32
    return %c0_i32, %c0_i32_0 : i32, i32
  }
  func.func @transform_6(%arg0: i32, %arg1: i32) -> (i32, i32) {
    %c0_i32 = arith.constant 0 : i32
    %c0_i32_0 = arith.constant 0 : i32
    %c0_i32_1 = arith.constant 0 : i32
    return %c0_i32, %c0_i32_0 : i32, i32
  }
  func.func @transform_7(%arg0: i32, %arg1: i32) -> (i32, i32) {
    %c0_i32 = arith.constant 0 : i32
    %c0_i32_0 = arith.constant 0 : i32
    %c0_i32_1 = arith.constant 0 : i32
    return %c0_i32, %c0_i32_0 : i32, i32
  }
  func.func @transform_8(%arg0: i32, %arg1: i32) -> (i32, i32) {
    %c0_i32 = arith.constant 0 : i32
    %c0_i32_0 = arith.constant 0 : i32
    %c0_i32_1 = arith.constant 0 : i32
    return %c0_i32, %c0_i32_0 : i32, i32
  }
  func.func @transform_9(%arg0: i32, %arg1: i32) -> (i32, i32, i32) {
    %c0_i32 = arith.constant 0 : i32
    %c0_i32_0 = arith.constant 0 : i32
    return %arg1, %arg0, %c0_i32 : i32, i32, i32
  }
  func.func @transform_10(%arg0: i32, %arg1: i32) -> (i32, i32) {
    %c0_i32 = arith.constant 0 : i32
    %c0_i32_0 = arith.constant 0 : i32
    return %c0_i32, %arg0 : i32, i32
  }
  func.func @transform_11(%arg0: i32, %arg1: i32) -> (i32, i32) {
    %c0_i32 = arith.constant 0 : i32
    %c0_i32_0 = arith.constant 0 : i32
    return %c0_i32, %arg0 : i32, i32
  }
  func.func @transform_12(%arg0: i32, %arg1: i32) -> (i32, i32) {
    %c0_i32 = arith.constant 0 : i32
    %c0_i32_0 = arith.constant 0 : i32
    return %c0_i32, %arg0 : i32, i32
  }
  func.func @transform_13(%arg0: i32, %arg1: i32) -> (i32, i32) {
    %c0_i32 = arith.constant 0 : i32
    %c0_i32_0 = arith.constant 0 : i32
    return %c0_i32, %arg0 : i32, i32
  }
}

</mosaic_0001>

<bundles_post_ra>
// kernel: rlseq_forward.1
= control target key start
LH: loop header
LB: loop body
LE: loop exit
PB: predicated region body
PF: predicated region fallthrough
CT: control target
= control target key end

     0   :  { %s1701_s0 = inlined_call_operand.vmem [shape: f32[2,8,32], index: 0, kind: input, shape index: {}]   ;;  %s1702_s1 = inlined_call_operand.vmem [shape: f32[2,32], index: 1, kind: input, shape index: {}]   ;;  %s1703_s2 = inlined_call_operand.vmem [shape: f32[128,32], index: 2, kind: input, shape index: {}]   ;;  %s1704_s3 = inlined_call_operand.vmem [shape: bf16[64,96], index: 3, kind: input, shape index: {}]   ;;  %s1705_s4 = inlined_call_operand.vmem [shape: f32[1,96], index: 4, kind: input, shape index: {}]   ;;  %s1706_s5 = inlined_call_operand.vmem [shape: bf16[64,128], index: 5, kind: input, shape index: {}]   ;;  %s1707_s6 = inlined_call_operand.vmem [shape: f32[1,128], index: 6, kind: input, shape index: {}]   ;;  %s1708_s7 = inlined_call_operand.vmem [shape: f32[32,1], index: 7, kind: input, shape index: {}]   ;;  %s1709_s8 = inlined_call_operand.<no memory space> [shape: f32[1,1], index: 8, kind: input, shape index: {}]   ;;  %s1710_s9 = inlined_call_operand.hbm [shape: f32[8,2,128], index: 9, kind: output, shape index: {0}]   ;;  %s1711_s10 = inlined_call_operand.vmem [shape: s32[8,2], index: 10, kind: output, shape index: {1}]   ;;  %s1712_s11 = inlined_call_operand.vmem [shape: f32[8,2], index: 11, kind: output, shape index: {2}]   ;;  %s1713_s12 = inlined_call_operand.vmem [shape: f32[8,2], index: 12, kind: output, shape index: {3}]   ;;  %s1714_s13 = inlined_call_operand.vmem [shape: f32[8,2], index: 13, kind: output, shape index: {4}]  }
   0x1   :  { %1721 = sst [smem:[#allocation13_spill]] %s1702_s1  ;;  %v19_v0 = vstv %s1709_s8 }
   0x2   :  { %20 = vst [vmem:[#allocation5] sm:$0x1] %v19_v0 }
   0x3   :  { %21 = vsyncpa [#allocation7], 0 }
   0x4   :  { %23 = vsyncpa [#allocation7 + $0x1], 0  ;;  %s1485_s27 = smov 0   ;;  %s1487_s28 = smov 0  }
   0x5   :  { %s1489_s29 = smov 0   ;;  %s1491_s30 = smov 0  }
   0x6   :  { %s1493_s14 = smov 0   ;;  %s1495_s15 = smov 0  }
   0x7 LB: > { %1722 = sst [smem:[#allocation9_spill]] %s1391_s29  ;;  %s1167_s8 = sadd.s32 4294967295, %s1403_s15   ;;  %s1403_s15 = sphi %s1495_s15, %s29_s15   ;;  %s1399_s14 = sphi %s1493_s14, %s1736_s14   ;;  %s1395_s30 = sphi %s1491_s30, %s1739_s30   ;;  %s1391_s29 = sphi %s1489_s29, %s1734_s29   ;;  %s1387_s28 = sphi %s1487_s28, %s1738_s28   ;;  %s1383_s27 = sphi %s1485_s27, %s1737_s27  }
   0x8   : > { %1723 = sst [smem:[#allocation10_spill]] %s1399_s14  ;;  %s1168_s16 = sadd.s32 4294967294, %s1403_s15  }
   0x9   : > { %s38_s17 = sadd.s32 1, %s1399_s14  ;;  %s249_s18 = sadd.s32 1, %s1391_s29 }
   0xa   : > { %p39_p0 = scmp.ge.s32.totalorder %s38_s17, 8  ;;  %p259_p1 = scmp.ne.s32.totalorder %s1391_s29, %s1387_s28 }
   0xb   : > { %p260_p2 = scmp.eq.s32.totalorder %s1167_s8, 7  ;;  %p265_p3 = scmp.ne.s32.totalorder %s1387_s28, %s1383_s27 }
   0xc   : > { %s1741_s17 = smov (%p39_p0, %s38_s17), 0  ;;  %p266_p5 = scmp.eq.s32.totalorder %s1168_s16, 7 }
   0xd   : > { %1724 = sst [smem:[#allocation11_spill]] %s1741_s17  ;;  %p1525_p4 = por %p260_p2, %p259_p1 }
   0xe   : > { %s244_s20 = ssub.s32 %s1399_s14, %s1741_s17  ;;  %p1172_p6 = scmp.ge.s32.totalorder %s1403_s15, 1 }
   0xf   : > { %p247_p7 = scmp.eq.s32.totalorder %s244_s20, 0  ;;  %p1532_p8 = por %p266_p5, %p265_p3 }
  0x10   : > { %p425_p9 = scmp.lt.s32.totalorder %s1403_s15, 9 }
  0x11   : > { %s1538_s22 = scalar_select %p247_p7, %s1391_s29, %s249_s18  }
  0x12   : > { %p426_p10 = pnand %p1172_p6, %p425_p9 }
  0x13   : > { %1727 = sst [smem:[#allocation12_spill]] %s1538_s22  ;;  %s1715_s23 = sand.u32 (!%p426_p10), 1, %s1387_s28  }
  0x14   : > { %429 = sbr.rel (%p426_p10) target bundleno = 2165 (0x875), region = 56  ;;  %s1543_s24 = sshll.u32 (!%p426_p10), %s1715_s23, 1 }
  0x15   : > { %p1174_p11 = scmp.ne.s32.totalorder (!%p426_p10), %s1395_s30, 0 }
  0x19   : > { %519 = sbr.rel (%p1174_p11) target bundleno = 34 (0x22), region = 60  ;;  %s1728_s1 = sld [smem:[#allocation13_spill]] (!%p1174_p11) }
  0x1e   : > { %vm521_vm0 = vcmask 254976   ;;  %vm523_vm1 = vcmask 1024   ;;  %v1405_v2 = vmov 2   ;;  %v1406_v3 = vmov 1.0  }
  0x1f   : > { %v520_v1 = vld [vmem:[%s1728_s1] sm:$0x3]  ;;  %524 = vst.msk [vmem:[#allocation3] sm:$0x3] %vm523_vm1, %v1405_v2 }
  0x20   : > { %522 = vst.msk [vmem:[#allocation2] sm:$0x3] %vm521_vm0, %v520_v1 }
  0x21   : > { %525 = vst.msk [vmem:[#allocation4] sm:$0x3] %vm523_vm1, %v1406_v3 }
  0x22 PF: > { %v1229_v6 = vld [vmem:[%s1704_s3 + $0x18] sm:$0xff]  ;;  %s1716_s20 = smov 32   ;;  %v1228_v8 = vld [vmem:[%s1704_s3 + $0x10] sm:$0xff]  ;;  %v1227_v9 = vld [vmem:[%s1704_s3 + $0x8] sm:$0xff]  ;;  %vm537_vm2 = vcmask 1040384   ;;  %vm544_vm3 = vcmask 261120   ;;  %s923_s16 = scalar_lea.vmem %s1712_s11, %s1395_s30 }
  0x23   : > { %591 = vmatpush.bf16.msra.mxu0 %v1229_v6  ;;  %v1226_v10 = vld [vmem:[%s1704_s3] sm:$0xff]  ;;  %vm583_vm4 = vcmask 523264   ;;  %s1408_s17 = smov 64   ;;  %v634_v38 = vld [vmem:[%s1701_s0 + $0x8] sm:$0xff]  ;;  %s1409_s25 = smov 96   ;;  %vm693_vm9 = vcmask 57344  }
  0x24   : > { %v1302_v18 = vld [vmem:[%s1705_s4] ss:$0 sm:$0xff]  ;;  %1195 = vmatpush.xpose.msk.msra.mxu2 %vm544_vm3, %v634_v38  ;;  %v884_v0 = vld [vmem:[%s1708_s7 + $0x18] sm:$0xff]  ;;  %v883_v1 = vld [vmem:[%s1708_s7 + $0x10] sm:$0xff]  ;;  %vm941_vm10 = vcmask 254976   ;;  %vm716_vm11 = vcmask 64512   ;;  %s931_s8 = scalar_lea.vmem %s1713_s12, %s1395_s30 }
  0x25   : > { %v633_v47 = vld [vmem:[%s1701_s0] sm:$0xff]  ;;  %v882_v2 = vld [vmem:[%s1708_s7 + $0x8] sm:$0xff]  ;;  %vm769_vm12 = vcmask 1041409   ;;  %vm828_vm13 = vcmask 1041408   ;;  %p844_p12 = scmp.lt.s32.totalorder %s1395_s30, 1  ;;  %s1730_s23 = scalar_lea.vmem [#allocation6], %s1543_s24 }
  0x26   : > { %v526_v5 = vld [vmem:[#allocation3] sm:$0x1]  ;;  %v530_v7 = vld [vmem:[#allocation3 + $0x1] sm:$0x1]  ;;  %1193 = vmatpush.xpose.msk.msra.mxu3 %vm544_vm3, %v633_v47  ;;  %s1219_s1 = sshll.u32 %s1395_s30, 1  ;;  %s1345_s24 = scalar_lea.hbm %s1710_s9, 16 }
  0x27   : > { %v539_v4 = vld [vmem:[#allocation2] sm:$0x3]  ;;  %1234 = vpush %v526_v5  ;;  %592 = vmatpush.bf16.msra.mxu0 %v1228_v8 }
  0x28   : > { %541 = vrot.lane.b32.xlu0 %v539_v4, %s1716_s20  ;;  %1236 = vpush %v530_v7  ;;  %903 = vmatpush.msrb.mxu2 %v884_v0  ;;  %v881_v3 = vld [vmem:[%s1708_s7] sm:$0xff] }
  0x2a   : > { %735 = vmatpush.msrb.mxu3 %v633_v47  ;;  %904 = vmatpush.msrb.mxu2 %v883_v1 }
  0x2b   : > { %593 = vmatpush.bf16.msra.mxu0 %v1227_v9 }
  0x2c   : > { %905 = vmatpush.msrb.mxu2 %v882_v2 }
  0x2e   : > { %906 = vmatpush.msrb.mxu2 %v881_v3 }
  0x2f   : > { %594 = vmatpush.bf16.msra.mxu0 %v1226_v10 }
  0x58   : > { %s1235_s18 = spop %1234 }
  0x59   : > { %s1237_s20 = spop %1236  ;;  %s528_s29 = scalar_lea.vmem %s1703_s2, %s1235_s18 }
  0x5a   : > { %s532_s22 = scalar_lea.vmem %s1703_s2, %s1237_s20  ;;  %v529_v13 = vld [vmem:[%s528_s29] sm:$0x1]  ;;  %s1729_s29 = smov 32  }
  0x5b   : > { %v533_v11 = vld [vmem:[%s532_s22] sm:$0x1]  ;;  %s974_s22 = scalar_lea.hbm %s1710_s9, %s1219_s1  ;;  %s1732_s20 = sand.u32 1, %s1387_s28  }
  0x5c   : > { %v535_v12 = vrot.slane %v533_v11, 7  ;;  %v1233_v11 = vld [vmem:[%s1706_s5 + $0x18] sm:$0xff] }
  0x5d   : > { %819 = vmatpush.bf16.msra.mxu1 %v1233_v11 }
  0x5e   : > { %v538_v15 = vsel %vm537_vm2, %v529_v13, %v535_v12  ;;  %v1232_v12 = vld [vmem:[%s1706_s5 + $0x10] sm:$0xff]  ;;  %v1231_v13 = vld [vmem:[%s1706_s5 + $0x8] sm:$0xff] }
  0x61   : > { %820 = vmatpush.bf16.msra.mxu1 %v1232_v12 }
  0x65   : > { %821 = vmatpush.bf16.msra.mxu1 %v1231_v13 }
  0x9a   : > { %v542_v14 = vpop.permute.xlu0 %541 }
  0x9b   : > { %v545_v16 = vsel %vm544_vm3, %v538_v15, %v542_v14 }
  0x9c   : > { %v546_v17 = vpack.c.bf16 %v545_v16, %v545_v16 }
  0x9e   : > { %1191 = vmatmul.msk.bf16.vlgmr.msra.gmra.mxu0 %vm583_vm4, %v546_v17 }
 0x11b   : > { %v596_v19 = vpop.f32.mrf.mxu0 }
 0x11c   : > { %v597_v20 = vadd.f32 %v1302_v18, %v596_v19  ;;  %v1230_v18 = vld [vmem:[%s1706_s5] sm:$0xff] }
 0x11d   : > { %822 = vmatpush.bf16.msra.mxu1 %v1230_v18 }
 0x11e   : > { %620 = vrot.lane.b32.xlu0 %v597_v20, %s1408_s17  ;;  %v1192_v22 = vmul.f32 -1.442695, %v597_v20 }
 0x120   : > { %1305 = vpow2.f32 %v1192_v22  ;;  %v1304_v22 = vld [vmem:[%s1707_s6] ss:$0 sm:$0xff] }
 0x123   : > { %v598_v21 = vpop.f32.mrf.mxu0 }
 0x126   : > { %v1306_v23 = vpop.eup %1305 }
 0x127   : > { %v603_v24 = vadd.f32 1.0, %v1306_v23 }
 0x129   : > { %1307 = vrcp.f32 %v603_v24  ;;  %v615_v30 = vand.u32 2147483648, %v603_v24  ;;  %vm609_vm6 = vweird.f32 %v603_v24  ;;  %v613_v31 = vand.u32 2147483647, %v603_v24 }
 0x12b   : > { %v616_v33 = vor.u32 1.1754944e-38, %v615_v30  ;;  %vm614_vm8 = vcmp.eq.f32.partialorder %v613_v31, 8.507059e+37 }
 0x12f   : > { %v1308_v25 = vpop.eup %1307 }
 0x130   : > { %v605_v26 = vmul.f32 %v1308_v25, %v603_v24  ;;  %vm610_vm5 = vweird.f32 %v1308_v25 }
 0x131   : > { %vm611_vm7 = vmor %vm609_vm6, %vm610_vm5  ;;  %vm915_vm5 = vcmask 8192   ;;  %vm943_vm6 = vcmask 1024  }
 0x132   : > { %v606_v27 = vsub.f32 1.0, %v605_v26 }
 0x134   : > { %v607_v28 = vmul.f32 %v1308_v25, %v606_v27 }
 0x136   : > { %v608_v29 = vadd.f32 %v1308_v25, %v607_v28 }
 0x138   : > { %v612_v32 = vsel %vm611_vm7, %v1308_v25, %v608_v29 }
 0x139   : > { %v617_v35 = vsel %vm614_vm8, %v616_v33, %v612_v32  ;;  %v840_v32 = vlaneseq }
 0x13a   : > { %v625_v39 = vsub.f32 1.0, %v617_v35  ;;  %v631_v41 = vmul.f32 %v617_v35, %v542_v14 }
 0x13b   : > { %v1626_v33 = vand.u32 127, %v840_v32 }
 0x13d   : > { %vm843_vm14 = vcmp.eq.s32.totalorder %v1626_v33, 3  ;;  %vm842_vm0 = vcmp.eq.s32.totalorder %v1626_v33, 1 }
 0x190   : > { %v621_v34 = vpop.permute.xlu0 %620 }
 0x191   : > { %v623_v36 = vmul.f32 %v621_v34, %v617_v35 }
 0x193   : > { %1309 = vtanh.f32 %v623_v36 }
 0x199   : > { %v1310_v37 = vpop.eup %1309 }
 0x19a   : > { %627 = vrot.lane.b32.xlu1 %v1310_v37, %s1729_s29 }
 0x20c   : > { %v628_v40 = vpop.permute.xlu1 %627 }
 0x20d   : > { %v630_v42 = vmul.f32 %v628_v40, %v625_v39  ;;  %v1410_v40 = vmov 0  }
 0x20e   : > { %1300 = vset.pattern.permute.xlu1 %v1410_v40  ;;  %1301 = vset.pattern.permute.xlu0 %v1410_v40 }
 0x20f   : > { %v632_v43 = vadd.f32 %v631_v41, %v630_v42 }
 0x211   : > { %v637_v44 = vperm.slane %v632_v43, 0  ;;  %v636_v45 = vrot.slane %v632_v43, 1 }
 0x213   : > { %638 = vrot.lane.b32.xlu1 %v637_v44, %s1409_s25  ;;  %v665_v46 = vperm.slane %v636_v45, 0 }
 0x215   : > { %666 = vrot.lane.b32.xlu2 %v665_v46, %s1409_s25 }
 0x26f   : > { %v667_v48 = vpop.permute.xlu2 %666 }
 0x270   : > { %1196 = vmatmul.msk.f32.vlgmr.msra.gmra.mxu2 %vm544_vm3, %v667_v48  ;;  %v871_v48 = vld [vmem:[#allocation4] sm:$0x3] }
 0x285   : > { %v639_v49 = vpop.permute.xlu1 %638 }
 0x286   : > { %1194 = vmatmul.msk.f32.vlgmr.msra.gmra.mxu3 %vm544_vm3, %v639_v49 }
 0x287   : > { %758 = vmatpush.msra.mxu3 %v634_v38 }
 0x2f3   : > { %v690_v50 = vpop.f32.mrf.mxu2 }
 0x2f4   : > { %v697_v51 = vsel %vm693_vm9, %v690_v50, -inf }
 0x2f5   : > { %698 = vmax.xlane.f32.xlu0 %v697_v51 }
 0x309   : > { %v662_v52 = vpop.f32.mrf.mxu3 }
 0x30a   : > { %v694_v53 = vsel %vm693_vm9, %v662_v52, -inf }
 0x30b   : > { %695 = vmax.xlane.f32.xlu2 %v694_v53 }
 0x368   : > { %v699_v54 = vpop.xlane.xlu0 %698 }
 0x369   : > { %v701_v55 = vsub.f32 %v690_v50, %v699_v54 }
 0x36b   : > { %v704_v56 = vmul.f32 1.442695, %v701_v55 }
 0x36d   : > { %1311 = vpow2.f32 %v704_v56 }
 0x373   : > { %v1312_v57 = vpop.eup %1311 }
 0x374   : > { %v709_v58 = vsel %vm693_vm9, %v1312_v57, 0.0 }
 0x375   : > { %710 = vadd.xlane.f32.xlu2 %v709_v58 }
 0x37e   : > { %v696_v59 = vpop.xlane.xlu2 %695 }
 0x37f   : > { %v700_v60 = vsub.f32 %v662_v52, %v696_v59 }
 0x381   : > { %v702_v61 = vmul.f32 1.442695, %v700_v60 }
 0x383   : > { %1313 = vpow2.f32 %v702_v61 }
 0x389   : > { %v1314_v62 = vpop.eup %1313 }
 0x38a   : > { %v706_v63 = vsel %vm693_vm9, %v1314_v62, 0.0 }
 0x38b   : > { %707 = vadd.xlane.f32.xlu1 %v706_v63 }
 0x38d   : > { %763 = vrot.lane.b32.xlu2 %v632_v43, %s1409_s25  ;;  %s978_s25 = sshll.u32 %s974_s22, 4  ;;  %s979_s25 = int_to_ptr.hbm [resolvable:$true] %s978_s25 }
 0x38e   : > { %s1339_s18 = sshra.s32 %s979_s25, 4  ;;  %s1340_s18 = int_to_ptr.hbm [resolvable:$true] %s1339_s18 }
 0x38f   : > { %s1341_s26 = scalar_lea.hbm %s1340_s18, 2  ;;  %p1346_p2 = scmp.lt.s32.totalorder %s1340_s18, %s1710_s9 }
 0x390   : > { %p1342_p13 = scmp.ne.s32.totalorder %s1340_s18, %s1341_s26  ;;  %p1347_p3 = scmp.lt.s32.totalorder %s1345_s24, %s1341_s26 }
 0x392   : > { %p1343_p0 = pnand %p1342_p13, %p1525_p4  ;;  %p1348_p5 = por %p1347_p3, %p1346_p2 }
 0x394   : > { %p1344_p1 = pneg %p1343_p0 }
 0x396   : > { %p1349_p6 = pnand %p1348_p5, %p1344_p1 }
 0x3e8   : > { %v711_v4 = vpop.xlane.xlu2 %710 }
 0x3f0   : > { %v764_v5 = vpop.permute.xlu2 %763 }
 0x3f1   : > { %942 = vst.msk [vmem:[#allocation2] sm:$0x3] %vm941_vm10, %v764_v5  ;;  %1217 = vmatmul.msk.f32.vlgmr.msrb.gmra.mxu2 %vm544_vm3, %v764_v5 }
 0x3fe   : > { %v708_v6 = vpop.xlane.xlu1 %707 }
 0x3ff   : > { %1315 = vrcp.f32 %v708_v6 }
 0x400   : > { %1317 = vrcp.f32 %v711_v4 }
 0x405   : > { %v1316_v7 = vpop.eup %1315 }
 0x406   : > { %v714_v8 = vmul.f32 %v1316_v7, %v1314_v62  ;;  %v1318_v9 = vpop.eup %1317 }
 0x407   : > { %v715_v10 = vmul.f32 %v1318_v9, %v1312_v57 }
 0x408   : > { %1197 = vmatmul.msk.f32.vlgmr.msrb.gmra.mxu3 %vm716_vm11, %v714_v8 }
 0x410   : > { %1198 = vmatmul.msk.f32.vlgmr.msra.gmra.mxu3 %vm716_vm11, %v715_v10 }
 0x48b   : > { %v737_v14 = vpop.f32.mrf.mxu3 }
 0x493   : > { %v760_v15 = vpop.f32.mrf.mxu3 }
 0x494   : > { %v768_v16 = vrot.slane %v760_v15, 7 }
 0x496   : > { %v770_v17 = vsel %vm769_vm12, %v768_v16, %v737_v14 }
 0x497   : > { %771 = vrot.lane.b32.xlu0 %v770_v17, %s1729_s29  ;;  %s845_s29 = scalar_select %p844_p12, 1, 0 }
 0x499   : > { %v846_v34 = vstv %s845_s29  ;;  %s1731_s29 = smov %s1730_s23 }
 0x49a   : > { %vm847_vm15 = vcmp.eq.s32.totalorder %v846_v34, 1 }
 0x49b   : > { %vm848_vm1 = vmand %vm843_vm14, %vm847_vm15 }
 0x49c   : > { %vm849_vm2 = vmor %vm842_vm0, %vm848_vm1 }
 0x509   : > { %v772_v19 = vpop.permute.xlu0 %771 }
 0x50a   : > { %v774_v20 = vsel %vm544_vm3, %v764_v5, %v772_v19 }
 0x50b   : > { %v775_v21 = vpack.c.bf16 %v774_v20, %v774_v20 }
 0x50d   : > { %1215 = vmatmul.msk.bf16.vlgmr.msra.gmra.mxu1 %vm583_vm4, %v775_v21 }
 0x58a   : > { %v824_v23 = vpop.f32.mrf.mxu1 }
 0x58b   : > { %v825_v24 = vadd.f32 %v1304_v22, %v824_v23 }
 0x58d   : > { %v829_v25 = vsel %vm828_vm13, %v825_v24, -inf }
 0x58e   : > { %830 = vmax.xlane.f32.xlu1 %v829_v25 }
 0x592   : > { %v826_v26 = vpop.f32.mrf.mxu1 }
 0x601   : > { %v831_v27 = vpop.xlane.xlu1 %830 }
 0x602   : > { %v832_v28 = vsub.f32 %v825_v24, %v831_v27 }
 0x604   : > { %v833_v29 = vmul.f32 1.442695, %v832_v28 }
 0x606   : > { %1319 = vpow2.f32 %v833_v29 }
 0x60c   : > { %v1320_v30 = vpop.eup %1319 }
 0x60d   : > { %v835_v31 = vsel %vm828_vm13, %v1320_v30, 0.0 }
 0x60e   : > { %836 = vadd.xlane.f32.xlu1 %v835_v31 }
 0x681   : > { %v837_v35 = vpop.xlane.xlu1 %836 }
 0x682   : > { %1321 = vrcp.f32 %v837_v35 }
 0x688   : > { %v1322_v36 = vpop.eup %1321 }
 0x689   : > { %v839_v37 = vmul.f32 %v1322_v36, %v1320_v30 }
 0x68b   : > { %v850_v38 = vsel %vm849_vm2, 0.0, %v839_v37 }
 0x68c   : > { %v851_v39 = vsel %vm828_vm13, %v850_v38, -inf  ;;  %912 = vst [vmem:[%s1730_s23] sm:$0x3] %v850_v38  ;;  %s976_s23 = sshll.u32 %s1731_s29, 4  ;;  %s977_s23 = int_to_ptr.vmem [resolvable:$true] %s976_s23 }
 0x68d   : > { %852 = vmax.xlane.f32.xlu1 %v851_v39 }
 0x700   : > { %v853_v41 = vpop.xlane.xlu1 %852 }
 0x701   : > { %vm854_vm3 = vcmp.eq.f32.partialorder %v850_v38, %v853_v41  ;;  %1323 = vlog2.f32 %v853_v41 }
 0x702   : > { %v855_v42 = vsel %vm854_vm3, %v1626_v33, 128 }
 0x703   : > { %v856_v43 = vsel %vm828_vm13, %v855_v42, 2147483647 }
 0x704   : > { %v858_v44 = vshra.s32 %v856_v43, 16  ;;  %v857_v51 = vand.u32 65535, %v856_v43 }
 0x706   : > { %v860_v45 = vcvt.s32.f32 %v858_v44  ;;  %v859_v53 = vcvt.s32.f32 %v857_v51 }
 0x707   : > { %v1324_v46 = vpop.eup %1323 }
 0x708   : > { %v873_v47 = vmul.f32 0.6931472, %v1324_v46  ;;  %861 = vmin.xlane.f32.xlu0 %v860_v45 }
 0x70a   : > { %v874_v49 = vsub.f32 0.0, %v873_v47 }
 0x70c   : > { %v875_v50 = vmul.f32 %v874_v49, %v871_v48 }
 0x70e   : > { %919 = vperm.xlu1 %1300, %v875_v50  }
 0x716   : > { %927 = vperm.xlu1 %1300, %v871_v48  }
 0x77b   : > { %v862_v52 = vpop.xlane.xlu0 %861 }
 0x77c   : > { %vm863_vm4 = vcmp.eq.f32.partialorder %v860_v45, %v862_v52  ;;  %v868_v59 = vcvt.f32.s32 %v862_v52 }
 0x77d   : > { %v864_v54 = vsel %vm863_vm4, %v859_v53, inf }
 0x77e   : > { %865 = vmin.xlane.f32.xlu2 %v864_v54  ;;  %v869_v61 = vshll.u32 %v868_v59, 16 }
 0x780   : > { %v920_v55 = vpop.permute.xlu1 %919 }
 0x781   : > { %v921_v56 = vperm.slane %v920_v55, %v1626_v33 }
 0x783   : > { %924 = vst.msk [vmem:[%s923_s16] sm:$0x1] %vm915_vm5, %v921_v56  ;;  %s947_s16 = scalar_lea.sflag [#allocation7], %s1732_s20 }
 0x788   : > { %v928_v57 = vpop.permute.xlu1 %927 }
 0x789   : > { %v929_v58 = vperm.slane %v928_v57, %v1626_v33 }
 0x78b   : > { %932 = vst.msk [vmem:[%s931_s8] sm:$0x1] %vm915_vm5, %v929_v58 }
 0x7f1   : > { %v866_v60 = vpop.xlane.xlu2 %865 }
 0x7f2   : > { %v867_v62 = vcvt.f32.s32 %v866_v60 }
 0x7f4   : > { %v870_v63 = vadd.s32 %v869_v61, %v867_v62 }
 0x7f5   : > { %1352 = shalt.err (!%p1349_p6)
}
 0x7f6   : > { %1238 = dma.vmem_to_hbm [thread:$0]  (%p1525_p4), %s977_s23, 32, %s979_s25, %s947_s16   ;;  %v1303_v0 = vld [vmem:[#allocation5] ss:$0 sm:$0xff]  ;;  %vm876_vm7 = vcmp.eq.s32.totalorder %v870_v63, 3  ;;  %v913_v1 = vperm.slane %v870_v63, %v1626_v33  ;;  %944 = vst.msk [vmem:[#allocation3] sm:$0x3] %vm943_vm6, %v870_v63  ;;  %v908_v2 = vpop.f32.mrf.mxu2 }
 0x7f7   : > { %s914_s20 = scalar_lea.vmem %s1711_s10, %s1395_s30  ;;  %v1411_v3 = vmov 0.0   ;;  %v909_v6 = vadd.f32 %v1303_v0, %v908_v2  ;;  %s939_s25 = scalar_lea.vmem %s1714_s13, %s1395_s30 }
 0x7f8   : > { %v1216_v4 = vsel %vm876_vm7, 1.0, %v1411_v3  ;;  %916 = vst.msk [vmem:[%s914_s20] sm:$0x1] %vm915_vm5, %v913_v1 }
 0x7f9   : > { %v879_v5 = vsub.f32 %v871_v48, %v1216_v4 }
 0x7fb   : > { %v880_v7 = vmax.f32 %v879_v5, 0.0 }
 0x7fd   : > { %v911_v8 = vmul.f32 %v909_v6, %v880_v7  ;;  %945 = vst.msk [vmem:[#allocation4] sm:$0x3] %vm943_vm6, %v880_v7 }
 0x7ff   : > { %935 = vperm.xlu1 %1300, %v911_v8  }
 0x871   : > { %v936_v9 = vpop.permute.xlu1 %935 }
 0x872   : > { %v937_v10 = vperm.slane %v936_v9, %v1626_v33 }
 0x874   : > { %940 = vst.msk [vmem:[%s939_s25] sm:$0x1] %vm915_vm5, %v937_v10 }
 0x875 PF: > { %p1244_p4 = scmp.ge.s32.totalorder %s1403_s15, 2  ;;  %s1030_s16 = sand.u32 1, %s1383_s27  }
 0x876   : > { %s1031_s18 = scalar_lea.sflag [#allocation7], %s1030_s16 }
 0x877   : > { %p1241_p7 = pnand %p1244_p4, %p1532_p8 }
 0x879   : > { %p1242_p9 = pneg %p1241_p7 }
 0x87b   : > { %1378 = dma.done.wait (%p1242_p9), %s1031_s18, 32  }
 0x87c   : > { %1380 = vsyncadd (%p1242_p9), %s1031_s18, 4294967264  ;;  %s29_s15 = sadd.s32 1, %s1403_s15   ;;  %s1733_s30 = sld [smem:[#allocation9_spill]] }
 0x87d   : > { %p26_p10 = scmp.ge.s32.totalorder %s29_s15, 10   ;;  %s1734_s29 = sld [smem:[#allocation12_spill]] }
 0x87e   : > { %s1735_s26 = sld [smem:[#allocation10_spill]]  ;;  %s1737_s27 = smov %s1387_s28 }
 0x87f   : > { %s1736_s14 = sld [smem:[#allocation11_spill]] }
 0x880   :  { %28 = sbr.rel (!%p26_p10) target bundleno = 7 (0x7), region = 152 }
 0x882   : > { %s1738_s28 = smov %s1733_s30 }
 0x884   : > { %s1739_s30 = smov %s1735_s26 }
 0x885   :  { %1037 = vsyncpa [#allocation7], 1 }
 0x886   :  { %1039 = vsyncpa [#allocation7 + $0x1], 1 }

</bundles_post_ra>
